<compile_context>
chip_gen: v6e
topology: v6e:2x2x1
jax: 0.10.0
libtpu: 0.0.40
codegen_flags: <defaults>
</compile_context>

<pallas_src>
import functools

import jax
import jax.numpy as jnp
from jax.experimental import pallas as pl
from jax.experimental.pallas import tpu as pltpu


# TODO(synk): the decoder-layer blocks (self-attn / cross-attn / FFN) are not
# defined in the reference module; `layers` is treated as empty (identity).

_F32_TEMPS = 3  # full-tile f32 intermediates live inside the kernel body


def _decoder_norm_kernel(x_ref, alpha_ref, bias_ref, o_ref, *, eps, n):
    """LayerNorm with PyTorch-style unbiased std and eps added to std."""
    x = x_ref[...].astype(jnp.float32)
    # Single-pass row statistics: sum and sum-of-squares do not serialize
    # through a centered intermediate, which halves the XLU reduction chain
    # (the binding slot on v7x, where 3.2 TB/s HBM lifts the memory roofline)
    # and drops one full-tile f32 intermediate.  Padded feature lanes (if any)
    # are zero so they contribute nothing; divide by the true feature count n.
    s1 = jnp.sum(x, axis=-1, keepdims=True)
    s2 = jnp.sum(x * x, axis=-1, keepdims=True)
    mean = s1 * (1.0 / n)
    # PyTorch Tensor.std() is unbiased (divides by n-1); eps is added to std,
    # NOT inside the sqrt.  The one-pass variance (s2 - mean*s1) can suffer
    # cancellation when |mean| >> std; clamp at 0.  Validated against the
    # two-pass reference at 1e-5 on activation-scale inputs — fall back to
    # two-pass centering if inputs carry huge DC offsets.
    var = jnp.maximum((s2 - mean * s1) * (1.0 / (n - 1)), 0.0)
    std = jnp.sqrt(var)
    # Operates on a (tile_rows, 1) column, so its cost is negligible either
    # way; approx=False keeps full precision for the 1e-5 tolerance.
    inv = pl.reciprocal(std + eps, approx=False)
    alpha = alpha_ref[...].astype(jnp.float32)
    bias = bias_ref[...].astype(jnp.float32)
    y = (x - mean) * inv * alpha + bias
    o_ref[...] = y.astype(o_ref.dtype)
    # NOTE: if a bundle dump still shows XLU saturating on v7x, both row
    # reductions can be pushed onto the idle MXU via jnp.dot(x, ones((F, 1))).


def _vmem_capacity_bytes():
    try:
        return int(pltpu.get_tpu_info().vmem_capacity_bytes)
    except Exception:
        return 64 * 1024 * 1024   # conservative (v7x-sized) fallback


def _choose_tile_rows(rows, features, itemsize, vmem_capacity):
    """Largest row tile that fits VMEM: double-buffered I/O + f32 temporaries."""
    if rows <= 16:
        return rows  # single full-extent block
    # Generation-aware budget: v7x has only 64 MiB VMEM per TensorCore, so
    # keep the footprint small there; v5e/v6e (128 MiB) can afford more.
    budget = min(24 * 1024 * 1024, vmem_capacity // 4)
    # Per-row bytes: double-buffered input + output tiles, plus in-kernel f32
    # temporaries (x.astype(f32), x*x, normalized result).
    bytes_per_row = 2 * 2 * features * itemsize + _F32_TEMPS * features * 4
    t = max(budget // bytes_per_row, 16)
    t = min(t, 1024)                          # bandwidth plateaus well before this
    t = min(t, max(256, pl.cdiv(rows, 8)))    # keep >= ~8 grid steps: balances both
                                              # v7x TCs, shrinks peak VMEM per step
    t = max((t // 16) * 16, 16)               # sublane alignment (bf16 needs 16)
    return min(t, rows)


def decoder_forward(x, encoder_output, src_mask, tgt_mask, alpha, bias,
                    *, eps=1e-5, tile_rows=None):
    """Pallas implementation of Decoder.forward (empty layer list + LayerNorm)."""
    del encoder_output, src_mask, tgt_mask  # unused: no decoder layers defined
    orig_shape = x.shape
    features = orig_shape[-1]
    if features < 2:
        # torch.Tensor.std() with one element divides by n-1 == 0 -> NaN;
        # fail loudly instead of silently producing NaNs.
        raise ValueError("LayerNormalization needs features >= 2 (unbiased std).")

    x2d = x.reshape(-1, features)
    rows = x2d.shape[0]
    itemsize = jnp.dtype(x.dtype).itemsize

    # Lane-dense layout: pad the feature axis up to a multiple of 128 so the
    # output stores are full-width vst instead of masked partial stores
    # (biggest single layout lever).  Zero padding leaves sum / sum-of-squares
    # unchanged; the kernel divides by the true `features`.
    f_pad = pl.cdiv(features, 128) * 128
    alpha2d = alpha.reshape(1, features)
    bias2d = bias.reshape(1, features)
    if f_pad != features:
        pad = f_pad - features
        x2d = jnp.pad(x2d, ((0, 0), (0, pad)))
        alpha2d = jnp.pad(alpha2d, ((0, 0), (0, pad)))
        bias2d = jnp.pad(bias2d, ((0, 0), (0, pad)))

    vmem_capacity = _vmem_capacity_bytes()
    if tile_rows is None:
        tile_rows = _choose_tile_rows(rows, f_pad, itemsize, vmem_capacity)
    tile_rows = min(int(tile_rows), rows)
    if tile_rows != rows and tile_rows % 16 != 0:
        tile_rows = min(max(16, (tile_rows // 16) * 16), rows)

    # pl.cdiv grid: ragged last block is handled by Pallas's padded read /
    # masked write; rows are independent so padded rows never contaminate.
    grid = (pl.cdiv(rows, tile_rows),)

    # VMEM accounting: double-buffered I/O tiles + in-kernel f32 temporaries +
    # resident (1, f_pad) scale/shift blocks.  Raise the scoped limit above
    # v5e's 16 MiB default but stay well under physical VMEM (64 MiB on v7x).
    io_bytes = 2 * 2 * tile_rows * f_pad * itemsize
    tmp_bytes = _F32_TEMPS * tile_rows * f_pad * 4
    param_bytes = 2 * 2 * f_pad * max(itemsize, 4)
    needed = io_bytes + tmp_bytes + param_bytes
    vmem_limit = int(min(max(needed + (8 << 20), 32 << 20),
                         max(vmem_capacity - (16 << 20), 32 << 20)))

    kernel = functools.partial(_decoder_norm_kernel, eps=eps, n=features)

    out = pl.pallas_call(
        kernel,
        out_shape=jax.ShapeDtypeStruct((rows, f_pad), x.dtype),
        grid_spec=pltpu.PrefetchScalarGridSpec(
            num_scalar_prefetch=0,
            grid=grid,
            in_specs=[
                pl.BlockSpec((tile_rows, f_pad), lambda i: (i, 0)),
                pl.BlockSpec((1, f_pad), lambda i: (0, 0)),
                pl.BlockSpec((1, f_pad), lambda i: (0, 0)),
            ],
            out_specs=pl.BlockSpec((tile_rows, f_pad), lambda i: (i, 0)),
        ),
        compiler_params=pltpu.CompilerParams(
            dimension_semantics=("parallel",),
            vmem_limit_bytes=vmem_limit),
        # NOTE: if the caller can donate x, input_output_aliases={0: 0} would
        # save the extra HBM output allocation (footprint only, not bandwidth).
    )(x2d, alpha2d, bias2d)

    if f_pad != features:
        out = out[:, :features]
    return out.reshape(orig_shape)


def _reference(x, alpha, bias, eps=1e-5):
    x = x.astype(jnp.float32)
    mean = jnp.mean(x, axis=-1, keepdims=True)
    var = jnp.sum((x - mean) ** 2, axis=-1, keepdims=True) / (x.shape[-1] - 1)
    std = jnp.sqrt(var)
    return alpha * (x - mean) / (std + eps) + bias


def _check(x, enc, sm, tm, alpha, bias, **kw):
    out = jax.block_until_ready(decoder_forward(x, enc, sm, tm, alpha, bias, **kw))
    ref = _reference(x, alpha, bias)
    assert out.shape == x.shape
    assert jnp.allclose(out, ref, atol=1e-5, rtol=1e-5), "mismatch vs reference"
    return out


if __name__ == "__main__":
    key = jax.random.PRNGKey(0)
    k0, k1, k2, k3, k4 = jax.random.split(key, 5)

    # --- case 1: lane-dense feature width, module-default params ---
    batch, seq, features = 2, 8, 128
    x = jax.random.normal(k0, (batch, seq, features), dtype=jnp.float32)
    encoder_output = jax.random.normal(k1, (batch, seq, features), dtype=jnp.float32)
    src_mask = jnp.ones((batch, 1, 1, seq), dtype=jnp.float32)
    tgt_mask = jnp.tril(jnp.ones((seq, seq), dtype=jnp.float32))[None, None]
    alpha = jnp.ones((features,), dtype=jnp.float32)   # nn.Parameter(torch.ones)
    bias = jnp.zeros((features,), dtype=jnp.float32)   # nn.Parameter(torch.zeros)
    _check(x, encoder_output, src_mask, tgt_mask, alpha, bias)

    # --- case 2: non-multiple-of-128 width exercises the lane-padding path ---
    f2 = 100
    x2 = jax.random.normal(k2, (batch, seq, f2), dtype=jnp.float32)
    a2 = jax.random.normal(k3, (f2,), dtype=jnp.float32)
    b2 = jax.random.normal(k4, (f2,), dtype=jnp.float32)
    _check(x2, encoder_output, src_mask, tgt_mask, a2, b2)

    # --- case 3: multi-step grid with a ragged last block (rows=40, tile=16) ---
    x3 = jax.random.normal(k2, (5, seq, features), dtype=jnp.float32)
    _check(x3, encoder_output, src_mask, tgt_mask, alpha, bias, tile_rows=16)

    print("KERNEL_OK")
</pallas_src>

<mosaic_0001>
module attributes {stable_mosaic.version = 11 : i64} {
  func.func @_decoder_norm_kernel(%arg0: i32, %arg1: memref<16x128xf32, #tpu.memory_space<vmem>>, %arg2: memref<1x128xf32, #tpu.memory_space<vmem>>, %arg3: memref<1x128xf32, #tpu.memory_space<vmem>>, %arg4: memref<16x128xf32, #tpu.memory_space<vmem>>) attributes {dimension_semantics = [#tpu.dimension_semantics<parallel>], iteration_bounds = array<i64: 1>, scalar_prefetch = 0 : i64, scratch_operands = 0 : i64, tpu.core_type = #tpu.core_type<tc>, window_params = [{transform_indices = @transform_0, window_bounds = array<i64: 16, 128>}, {pipeline_mode = #tpu.pipeline_mode<synchronous>, transform_indices = @transform_1, window_bounds = array<i64: 1, 128>}, {pipeline_mode = #tpu.pipeline_mode<synchronous>, transform_indices = @transform_2, window_bounds = array<i64: 1, 128>}, {transform_indices = @transform_3, window_bounds = array<i64: 16, 128>}]} {
    %c0 = arith.constant 0 : index
    %c0_0 = arith.constant 0 : index
    %0 = vector.load %arg1[%c0, %c0_0] : memref<16x128xf32, #tpu.memory_space<vmem>>, vector<16x128xf32>
    %cst = arith.constant dense<0.000000e+00> : vector<16xf32>
    %1 = vector.multi_reduction <add>, %0, %cst [1] : vector<16x128xf32> to vector<16xf32>
    %2 = vector.shape_cast %1 : vector<16xf32> to vector<16x1xf32>
    %3 = arith.mulf %0, %0 : vector<16x128xf32>
    %cst_1 = arith.constant dense<0.000000e+00> : vector<16xf32>
    %4 = vector.multi_reduction <add>, %3, %cst_1 [1] : vector<16x128xf32> to vector<16xf32>
    %5 = vector.shape_cast %4 : vector<16xf32> to vector<16x1xf32>
    %cst_2 = arith.constant 7.812500e-03 : f32
    %6 = vector.broadcast %cst_2 : f32 to vector<16x1xf32>
    %7 = arith.mulf %2, %6 : vector<16x1xf32>
    %8 = arith.mulf %7, %2 : vector<16x1xf32>
    %9 = arith.subf %5, %8 : vector<16x1xf32>
    %cst_3 = arith.constant 0.00787401571 : f32
    %10 = vector.broadcast %cst_3 : f32 to vector<16x1xf32>
    %11 = arith.mulf %9, %10 : vector<16x1xf32>
    %cst_4 = arith.constant 0.000000e+00 : f32
    %12 = vector.broadcast %cst_4 : f32 to vector<16x1xf32>
    %13 = arith.maximumf %11, %12 : vector<16x1xf32>
    %14 = math.sqrt %13 : vector<16x1xf32>
    %cst_5 = arith.constant 9.99999974E-6 : f32
    %15 = vector.broadcast %cst_5 : f32 to vector<16x1xf32>
    %16 = arith.addf %14, %15 : vector<16x1xf32>
    %17 = tpu.reciprocal %16 : vector<16x1xf32> -> vector<16x1xf32>
    %c0_6 = arith.constant 0 : index
    %c0_7 = arith.constant 0 : index
    %18 = vector.load %arg2[%c0_6, %c0_7] : memref<1x128xf32, #tpu.memory_space<vmem>>, vector<1x128xf32>
    %c0_8 = arith.constant 0 : index
    %c0_9 = arith.constant 0 : index
    %19 = vector.load %arg3[%c0_8, %c0_9] : memref<1x128xf32, #tpu.memory_space<vmem>>, vector<1x128xf32>
    %20 = vector.broadcast %7 : vector<16x1xf32> to vector<16x128xf32>
    %21 = arith.subf %0, %20 : vector<16x128xf32>
    %22 = vector.broadcast %17 : vector<16x1xf32> to vector<16x128xf32>
    %23 = arith.mulf %21, %22 : vector<16x128xf32>
    %24 = vector.broadcast %18 : vector<1x128xf32> to vector<16x128xf32>
    %25 = arith.mulf %23, %24 : vector<16x128xf32>
    %26 = vector.broadcast %19 : vector<1x128xf32> to vector<16x128xf32>
    %27 = arith.addf %25, %26 : vector<16x128xf32>
    %c0_10 = arith.constant 0 : index
    %c0_11 = arith.constant 0 : index
    %28 = vector.load %arg4[%c0_10, %c0_11] : memref<16x128xf32, #tpu.memory_space<vmem>>, vector<16x128xf32>
    tpu.vector_store %arg4[%c0_10, %c0_11], %27 {strides = array<i32>} : memref<16x128xf32, #tpu.memory_space<vmem>>, vector<16x128xf32>,
    return
  }
  func.func @transform_0(%arg0: i32) -> (i32, i32) {
    %c0_i32 = arith.constant 0 : i32
    %c0_i32_0 = arith.constant 0 : i32
    return %arg0, %c0_i32 : i32, i32
  }
  func.func @transform_1(%arg0: i32) -> (i32, i32) {
    %c0_i32 = arith.constant 0 : i32
    %c0_i32_0 = arith.constant 0 : i32
    %c0_i32_1 = arith.constant 0 : i32
    return %c0_i32, %c0_i32_0 : i32, i32
  }
  func.func @transform_2(%arg0: i32) -> (i32, i32) {
    %c0_i32 = arith.constant 0 : i32
    %c0_i32_0 = arith.constant 0 : i32
    %c0_i32_1 = arith.constant 0 : i32
    return %c0_i32, %c0_i32_0 : i32, i32
  }
  func.func @transform_3(%arg0: i32) -> (i32, i32) {
    %c0_i32 = arith.constant 0 : i32
    %c0_i32_0 = arith.constant 0 : i32
    return %arg0, %c0_i32 : i32, i32
  }
}

</mosaic_0001>

<bundles_post_ra>
// kernel: tpu_custom_call.1
= control target key start
LH: loop header
LB: loop body
LE: loop exit
PB: predicated region body
PF: predicated region fallthrough
CT: control target
= control target key end

     0   :  { %8 = vsyncpa [#allocation3], 0  ;;  %s210_s0 = inlined_call_operand.hbm [shape: f32[16,128], index: 0, kind: input, shape index: {}]   ;;  %s211_s1 = inlined_call_operand.vmem [shape: f32[1,128], index: 1, kind: input, shape index: {}]   ;;  %s212_s2 = inlined_call_operand.vmem [shape: f32[1,128], index: 2, kind: input, shape index: {}]   ;;  %s213_s3 = inlined_call_operand.hbm [shape: f32[16,128], index: 3, kind: output, shape index: {}]  }
   0x1   :  { %9 = vsyncpa [#allocation4], 0  ;;  %s168_s12 = smov [#allocation2]  }
   0x2   :  { %s15_s13 = sshll.u32 %s168_s12, 4  ;;  %s16_s13 = int_to_ptr.vmem [resolvable:$true] %s15_s13 }
   0x3   :  { %s132_s14 = scalar_lea.vmem %s16_s13, 256  ;;  %p137_p1 = scmp.lt.s32.totalorder %s16_s13, %s16_s13 }
   0x4   :  { %p133_p0 = scmp.ne.s32.totalorder %s16_s13, %s132_s14  ;;  %p138_p2 = scmp.lt.s32.totalorder %s132_s14, %s132_s14 }
   0x6   :  { %p139_p3 = por %p138_p2, %p137_p1 }
   0x8   :  { %p140_p4 = pnand %p139_p3, %p133_p0 }
   0xa   :  { %143 = shalt.err (!%p140_p4)
}
   0xb   :  { %s169_s15 = smov 128   ;;  %s170_s16 = smov 8  }
   0xc   :  { %21 = dma.hbm_to_vmem [thread:$0]  %s210_s0, 256, %s16_s13, [#allocation3], %s169_s15, %s169_s15, %s170_s16  }
   0xd   :  { %164 = dma.done.wait [#allocation3], 256  }
   0xe   :  { %165 = vsyncadd [#allocation3], 4294967040  ;;  %v29_v0 = vld [vmem:[#allocation2] sm:$0xff]  ;;  %v30_v2 = vld [vmem:[#allocation2 + $0x8] sm:$0xff]  ;;  %s171_s22 = smov [#allocation5]  }
   0xf   :  { %31 = vadd.xlane.f32.xlu0 %v29_v0  ;;  %v35_v1 = vmul.f32 %v29_v0, %v29_v0  ;;  %v36_v3 = vmul.f32 %v30_v2, %v30_v2  ;;  %v110_v32 = vld [vmem:[%s211_s1] ss:$0 sm:$0xff]  ;;  %s98_s23 = sshll.u32 %s171_s22, 4  ;;  %s99_s23 = int_to_ptr.vmem [resolvable:$true] %s98_s23 }
  0x10   :  { %v111_v34 = vld [vmem:[%s212_s2] ss:$0 sm:$0xff]  ;;  %s144_s24 = scalar_lea.vmem %s99_s23, 256  ;;  %p149_p6 = scmp.lt.s32.totalorder %s99_s23, %s99_s23 }
  0x11   :  { %37 = vadd.xlane.f32.xlu1 %v35_v1  ;;  %p145_p5 = scmp.ne.s32.totalorder %s99_s23, %s144_s24  ;;  %p150_p7 = scmp.lt.s32.totalorder %s144_s24, %s144_s24 }
  0x13   :  { %33 = vadd.xlane.f32.xlu0 %v30_v2  ;;  %p151_p8 = por %p150_p7, %p149_p6 }
  0x15   :  { %39 = vadd.xlane.f32.xlu1 %v36_v3  ;;  %p152_p9 = pnand %p151_p8, %p145_p5 }
  0x98   :  { %v32_v4 = vpop.xlane.xlu0 %31 }
  0x99   :  { %v41_v5 = vmul.f32 0.0078125, %v32_v4 }
  0x9a   :  { %v38_v6 = vpop.xlane.xlu1 %37 }
  0x9b   :  { %v43_v7 = vmul.f32 %v41_v5, %v32_v4  ;;  %v71_v30 = vsub.f32 %v29_v0, %v41_v5 }
  0x9c   :  { %v34_v8 = vpop.xlane.xlu0 %33 }
  0x9d   :  { %v42_v9 = vmul.f32 0.0078125, %v34_v8  ;;  %v45_v10 = vsub.f32 %v38_v6, %v43_v7 }
  0x9e   :  { %v40_v11 = vpop.xlane.xlu1 %39 }
  0x9f   :  { %v44_v12 = vmul.f32 %v42_v9, %v34_v8  ;;  %v47_v13 = vmul.f32 0.007874016, %v45_v10  ;;  %v72_v36 = vsub.f32 %v30_v2, %v42_v9 }
  0xa1   :  { %v49_v14 = vmax.f32 %v47_v13, 0.0  ;;  %v46_v15 = vsub.f32 %v40_v11, %v44_v12 }
  0xa3   :  { %116 = vrsqrt.f32 %v49_v14  ;;  %v48_v16 = vmul.f32 0.007874016, %v46_v15  ;;  %vm53_vm0 = vcmp.eq.f32.partialorder %v49_v14, inf  ;;  %v56_v20 = vand.u32 2147483648, %v49_v14 }
  0xa4   :  { %vm55_vm1 = vcmp.eq.f32.partialorder %v49_v14, 0.0 }
  0xa5   :  { %v50_v17 = vmax.f32 %v48_v16, 0.0 }
  0xa7   :  { %118 = vrsqrt.f32 %v50_v17  ;;  %vm60_vm2 = vcmp.eq.f32.partialorder %v50_v17, inf  ;;  %v63_v26 = vand.u32 2147483648, %v50_v17  ;;  %vm62_vm3 = vcmp.eq.f32.partialorder %v50_v17, 0.0 }
  0xb0   :  { %v117_v18 = vpop.eup %116 }
  0xb1   :  { %v52_v19 = vmul.f32 %v117_v18, %v49_v14 }
  0xb3   :  { %v54_v21 = vsel %vm53_vm0, %v49_v14, %v52_v19 }
  0xb4   :  { %v57_v22 = vsel %vm55_vm1, %v56_v20, %v54_v21  ;;  %v119_v23 = vpop.eup %118 }
  0xb5   :  { %v65_v24 = vadd.f32 1e-05, %v57_v22  ;;  %v59_v25 = vmul.f32 %v119_v23, %v50_v17 }
  0xb7   :  { %120 = vrcp.f32 %v65_v24  ;;  %v61_v27 = vsel %vm60_vm2, %v50_v17, %v59_v25 }
  0xb8   :  { %v64_v28 = vsel %vm62_vm3, %v63_v26, %v61_v27 }
  0xb9   :  { %v66_v29 = vadd.f32 1e-05, %v64_v28 }
  0xbb   :  { %122 = vrcp.f32 %v66_v29 }
  0xc4   :  { %v121_v31 = vpop.eup %120 }
  0xc5   :  { %v73_v33 = vmul.f32 %v121_v31, %v71_v30 }
  0xc7   :  { %v81_v35 = vmul.f32 %v110_v32, %v73_v33 }
  0xc8   :  { %v123_v37 = vpop.eup %122 }
  0xc9   :  { %v89_v38 = vadd.f32 %v111_v34, %v81_v35  ;;  %v74_v39 = vmul.f32 %v123_v37, %v72_v36 }
  0xcb   :  { %91 = vst [vmem:[#allocation5] sm:$0xff] %v89_v38  ;;  %v82_v40 = vmul.f32 %v110_v32, %v74_v39 }
  0xcd   :  { %v90_v41 = vadd.f32 %v111_v34, %v82_v40 }
  0xcf   :  { %92 = vst [vmem:[#allocation5 + $0x8] sm:$0xff] %v90_v41 }
  0xd0   :  { %155 = shalt.err (!%p152_p9)
}
  0xd1   :  { %104 = dma.vmem_to_hbm [thread:$0]  %s99_s23, 256, %s213_s3, [#allocation4], %s169_s15, %s169_s15, %s170_s16  }
  0xd2   :  { %166 = dma.done.wait [#allocation4], 256  }
  0xd3   :  { %167 = vsyncadd [#allocation4], 4294967040 }
  0xd4   :  { %108 = vsyncpa [#allocation3], 1 }
  0xd5   :  { %109 = vsyncpa [#allocation4], 1 }

</bundles_post_ra>
